<compile_context>
chip_gen: v7x
topology: tpu7x:2x2x1
jax: 0.10.0
libtpu: 0.0.40
codegen_flags: <defaults>
</compile_context>

<pallas_src>
import jax
import jax.numpy as jnp
from jax import lax
from jax.experimental import pallas as pl
from jax.experimental.pallas import tpu as pltpu


MASK_VALUE = -1000000.0  # matches SequenceMask's default `value`
LANE = 128               # TPU lane width; head dim is zero-padded to this


def _self_attn_kernel(x_ref,        # (B, T, C)      f32
                      wqkv_ref,     # (C, 3*Wp)      f32  (q|k|v packed, zero-padded)
                      bqkv_ref,     # (1, 3*Wp)      f32
                      valid_ref,    # (B, 1, 1)      int32
                      out_ref):     # (B, T, Wp)     f32
    B, T, C = x_ref.shape
    Wp = out_ref.shape[-1]

    # --- fused qkv projection: one MXU pass with N = 3*Wp lanes -----------------
    x2d = x_ref[...].reshape(B * T, C)
    qkv = jnp.dot(x2d, wqkv_ref[...],
                  preferred_element_type=jnp.float32) + bqkv_ref[...]   # (B*T, 3Wp)

    q = qkv[:, 0 * Wp:1 * Wp].reshape(B, T, Wp)
    k = qkv[:, 1 * Wp:2 * Wp].reshape(B, T, Wp)
    v = qkv[:, 2 * Wp:3 * Wp].reshape(B, T, Wp)

    # --- scores = q @ k^T (batched, contract last dims; no transpose of k) ------
    # bf16 operands, f32 accumulation. Zero-padded lanes contribute nothing.
    scores = lax.dot_general(
        q.astype(jnp.bfloat16), k.astype(jnp.bfloat16),
        dimension_numbers=(((2,), (2,)), ((0,), (0,))),
        preferred_element_type=jnp.float32)                              # (B, T, T)

    # --- SequenceMask: key positions >= valid_len[b] get -1e6 (f32) -------------
    col_ids = lax.broadcasted_iota(jnp.int32, scores.shape, 2)           # (B, T, T)
    vl = valid_ref[...]                                                  # (B, 1, 1)
    masked = jnp.where(col_ids < vl, scores, MASK_VALUE)

    # --- softmax over keys (f32 math; reciprocal on the EUP) --------------------
    m = jnp.max(masked, axis=-1, keepdims=True)
    e = jnp.exp(masked - m)
    denom = jnp.sum(e, axis=-1, keepdims=True)
    attn = e * pl.reciprocal(denom, approx=True)

    # --- output = attn @ v (batched, bf16 operands, f32 accumulation) -----------
    out = lax.dot_general(
        attn.astype(jnp.bfloat16), v.astype(jnp.bfloat16),
        dimension_numbers=(((2,), (1,)), ((0,), (0,))),
        preferred_element_type=jnp.float32)                              # (B, T, Wp)
    out_ref[...] = out.astype(out_ref.dtype)


def self_attention_layer(x, valid_len, params):
    """x: (B, T, C) f32, valid_len: (B,) int, params: dict of (C,W) weights / (W,) biases."""
    B, T, C = x.shape
    W = params["wq"].shape[1]
    Wp = max(LANE, ((W + LANE - 1) // LANE) * LANE)   # lane-dense head dim

    def pad_w(w):   # (C, W) -> (C, Wp), zero-padded
        return jnp.pad(w.astype(jnp.float32), ((0, 0), (0, Wp - W)))

    def pad_b(b):   # (W,) -> (Wp,), zero-padded
        return jnp.pad(b.astype(jnp.float32), ((0, Wp - W),))

    # Pack q|k|v into one lane-dense weight / bias.
    wqkv = jnp.concatenate(
        [pad_w(params["wq"]), pad_w(params["wk"]), pad_w(params["wv"])], axis=1)  # (C, 3Wp)
    bqkv = jnp.concatenate(
        [pad_b(params["bq"]), pad_b(params["bk"]), pad_b(params["bv"])]).reshape(1, 3 * Wp)

    vlen = valid_len.astype(jnp.int32).reshape(B, 1, 1)

    out_padded = pl.pallas_call(
        _self_attn_kernel,
        out_shape=jax.ShapeDtypeStruct((B, T, Wp), jnp.float32),
        in_specs=[
            pl.BlockSpec((B, T, C), lambda: (0, 0, 0)),        # x (whole array)
            pl.BlockSpec((C, 3 * Wp), lambda: (0, 0)),         # packed weights
            pl.BlockSpec((1, 3 * Wp), lambda: (0, 0)),         # packed biases
            pl.BlockSpec((B, 1, 1), lambda: (0, 0, 0)),        # valid lengths
        ],
        out_specs=pl.BlockSpec((B, T, Wp), lambda: (0, 0, 0)),
    )(x, wqkv, bqkv, vlen)

    # Strip the lane padding back to the module's global_graph_width.
    return out_padded[:, :, :W]


def _reference(x, valid_len, params):
    """Pure-JAX (f32) reference mirroring the PyTorch forward."""
    q = x @ params["wq"] + params["bq"]
    k = x @ params["wk"] + params["bk"]
    v = x @ params["wv"] + params["bv"]
    scores = jnp.einsum("btd,bsd->bts", q, k)
    T = scores.shape[-1]
    mask = jnp.arange(T)[None, None, :] < valid_len[:, None, None]
    scores = jnp.where(mask, scores, MASK_VALUE)
    attn = jax.nn.softmax(scores, axis=-1)
    return jnp.einsum("bts,bsd->btd", attn, v)


if __name__ == "__main__":
    B, T, C_in, width = 2, 8, 16, 32   # batch, seq, in_channels, global_graph_width

    key = jax.random.PRNGKey(0)
    kx, kq, kk, kv, kbq, kbk, kbv = jax.random.split(key, 7)

    x = jax.random.normal(kx, (B, T, C_in), dtype=jnp.float32)
    valid_len = jnp.array([5, 8], dtype=jnp.int32)

    scale = 1.0 / float(jnp.sqrt(C_in))
    params = {
        "wq": jax.random.uniform(kq, (C_in, width), jnp.float32, -scale, scale),
        "wk": jax.random.uniform(kk, (C_in, width), jnp.float32, -scale, scale),
        "wv": jax.random.uniform(kv, (C_in, width), jnp.float32, -scale, scale),
        "bq": jax.random.uniform(kbq, (width,), jnp.float32, -scale, scale),
        "bk": jax.random.uniform(kbk, (width,), jnp.float32, -scale, scale),
        "bv": jax.random.uniform(kbv, (width,), jnp.float32, -scale, scale),
    }

    out = self_attention_layer(x, valid_len, params)
    out = jax.block_until_ready(out)

    ref = _reference(x, valid_len, params)
    assert out.shape == (B, T, width)
    # bf16 MXU operands (with f32 accumulation) + approx reciprocal -> compare
    # against the pure-f32 reference with a correspondingly looser tolerance.
    max_err = float(jnp.max(jnp.abs(out - ref)))
    assert jnp.allclose(out, ref, atol=5e-2, rtol=5e-2), f"max abs err {max_err}"

    print("KERNEL_OK")
</pallas_src>

<mosaic_0001>
module attributes {stable_mosaic.version = 11 : i64} {
  func.func @_self_attn_kernel(%arg0: memref<2x8x16xf32, #tpu.memory_space<vmem>>, %arg1: memref<16x384xf32, #tpu.memory_space<vmem>>, %arg2: memref<1x384xf32, #tpu.memory_space<vmem>>, %arg3: memref<2x1x1xi32, #tpu.memory_space<vmem>>, %arg4: memref<2x8x128xf32, #tpu.memory_space<vmem>>) attributes {dimension_semantics = [], scalar_prefetch = 0 : i64, scratch_operands = 0 : i64, tpu.core_type = #tpu.core_type<tc>} {
    %c0 = arith.constant 0 : index
    %c0_0 = arith.constant 0 : index
    %c0_1 = arith.constant 0 : index
    %0 = vector.load %arg0[%c0, %c0_0, %c0_1] : memref<2x8x16xf32, #tpu.memory_space<vmem>>, vector<2x8x16xf32>
    %1 = vector.shape_cast %0 : vector<2x8x16xf32> to vector<16x16xf32>
    %c0_2 = arith.constant 0 : index
    %c0_3 = arith.constant 0 : index
    %2 = vector.load %arg1[%c0_2, %c0_3] : memref<16x384xf32, #tpu.memory_space<vmem>>, vector<16x384xf32>
    %cst = arith.constant dense<0.000000e+00> : vector<16x384xf32>
    %3 = tpu.matmul %1, %2, %cst {dimension_numbers = #tpu.dot_dimension_numbers<[1], [0], [0], [1], [0, 0, 1, 1], [], []>} : vector<16x16xf32>, vector<16x384xf32>, vector<16x384xf32> -> vector<16x384xf32>
    %c0_4 = arith.constant 0 : index
    %c0_5 = arith.constant 0 : index
    %4 = vector.load %arg2[%c0_4, %c0_5] : memref<1x384xf32, #tpu.memory_space<vmem>>, vector<1x384xf32>
    %5 = vector.broadcast %4 : vector<1x384xf32> to vector<16x384xf32>
    %6 = arith.addf %3, %5 : vector<16x384xf32>
    %7 = vector.extract_strided_slice %6 {offsets = [0, 0], sizes = [16, 128], strides = [1, 1]} : vector<16x384xf32> to vector<16x128xf32>
    %8 = vector.shape_cast %7 : vector<16x128xf32> to vector<2x8x128xf32>
    %9 = vector.extract_strided_slice %6 {offsets = [0, 128], sizes = [16, 128], strides = [1, 1]} : vector<16x384xf32> to vector<16x128xf32>
    %10 = vector.shape_cast %9 : vector<16x128xf32> to vector<2x8x128xf32>
    %11 = vector.extract_strided_slice %6 {offsets = [0, 256], sizes = [16, 128], strides = [1, 1]} : vector<16x384xf32> to vector<16x128xf32>
    %12 = vector.shape_cast %11 : vector<16x128xf32> to vector<2x8x128xf32>
    %13 = arith.truncf %8 : vector<2x8x128xf32> to vector<2x8x128xbf16>
    %14 = arith.truncf %10 : vector<2x8x128xf32> to vector<2x8x128xbf16>
    %cst_6 = arith.constant dense<0.000000e+00> : vector<2x8x8xf32>
    %15 = tpu.matmul %13, %14, %cst_6 {dimension_numbers = #tpu.dot_dimension_numbers<[2], [2], [1], [1], [0, 0, 0, 1, 1, 1], [0], [0]>} : vector<2x8x128xbf16>, vector<2x8x128xbf16>, vector<2x8x8xf32> -> vector<2x8x8xf32>
    %16 = tpu.iota {dimensions = array<i32: 2>} : vector<2x8x8xi32>
    %c0_7 = arith.constant 0 : index
    %c0_8 = arith.constant 0 : index
    %c0_9 = arith.constant 0 : index
    %17 = vector.load %arg3[%c0_7, %c0_8, %c0_9] : memref<2x1x1xi32, #tpu.memory_space<vmem>>, vector<2x1x1xi32>
    %18 = vector.broadcast %17 : vector<2x1x1xi32> to vector<2x8x8xi32>
    %19 = arith.cmpi slt, %16, %18 : vector<2x8x8xi32>
    %cst_10 = arith.constant -1.000000e+06 : f32
    %20 = vector.broadcast %cst_10 : f32 to vector<2x8x8xf32>
    %21 = arith.select %19, %15, %20 : vector<2x8x8xi1>, vector<2x8x8xf32>
    %cst_11 = arith.constant dense<0xFF800000> : vector<2x8xf32>
    %22 = vector.multi_reduction <maximumf>, %21, %cst_11 [2] : vector<2x8x8xf32> to vector<2x8xf32>
    %23 = vector.shape_cast %22 : vector<2x8xf32> to vector<2x8x1xf32>
    %24 = vector.broadcast %23 : vector<2x8x1xf32> to vector<2x8x8xf32>
    %25 = arith.subf %21, %24 : vector<2x8x8xf32>
    %26 = math.exp %25 : vector<2x8x8xf32>
    %cst_12 = arith.constant dense<0.000000e+00> : vector<2x8xf32>
    %27 = vector.multi_reduction <add>, %26, %cst_12 [2] : vector<2x8x8xf32> to vector<2x8xf32>
    %28 = vector.shape_cast %27 : vector<2x8xf32> to vector<2x8x1xf32>
    %29 = tpu.reciprocal %28 {approx = true} : vector<2x8x1xf32> -> vector<2x8x1xf32>
    %30 = vector.broadcast %29 : vector<2x8x1xf32> to vector<2x8x8xf32>
    %31 = arith.mulf %26, %30 : vector<2x8x8xf32>
    %32 = arith.truncf %31 : vector<2x8x8xf32> to vector<2x8x8xbf16>
    %33 = arith.truncf %12 : vector<2x8x128xf32> to vector<2x8x128xbf16>
    %cst_13 = arith.constant dense<0.000000e+00> : vector<2x8x128xf32>
    %34 = tpu.matmul %32, %33, %cst_13 {dimension_numbers = #tpu.dot_dimension_numbers<[2], [1], [1], [2], [0, 0, 0, 1, 1, 2], [0], [0]>} : vector<2x8x8xbf16>, vector<2x8x128xbf16>, vector<2x8x128xf32> -> vector<2x8x128xf32>
    %c0_14 = arith.constant 0 : index
    %c0_15 = arith.constant 0 : index
    %c0_16 = arith.constant 0 : index
    %35 = vector.load %arg4[%c0_14, %c0_15, %c0_16] : memref<2x8x128xf32, #tpu.memory_space<vmem>>, vector<2x8x128xf32>
    tpu.vector_store %arg4[%c0_14, %c0_15, %c0_16], %34 {strides = array<i32>} : memref<2x8x128xf32, #tpu.memory_space<vmem>>, vector<2x8x128xf32>,
    return
  }
}

</mosaic_0001>

<bundles_post_ra>
// kernel: tpu_custom_call.1
= control target key start
LH: loop header
LB: loop body
LE: loop exit
PB: predicated region body
PF: predicated region fallthrough
CT: control target
= control target key end

     0   :  { %9 = vsyncpa [#allocation3], 0  ;;  %s727_s0 = inlined_call_operand.hbm [shape: f32[2,8,16], index: 0, kind: input, shape index: {}]   ;;  %s728_s1 = inlined_call_operand.hbm [shape: f32[16,384], index: 1, kind: input, shape index: {}]   ;;  %s729_s2 = inlined_call_operand.vmem [shape: f32[1,384], index: 2, kind: input, shape index: {}]   ;;  %s730_s3 = inlined_call_operand.vmem [shape: s32[2,1,1], index: 3, kind: input, shape index: {}]   ;;  %s731_s4 = inlined_call_operand.hbm [shape: f32[2,8,128], index: 4, kind: output, shape index: {}]  }
   0x1   :  { %10 = vsyncpa [#allocation6], 0 }
   0x2   :  { %11 = vsyncpa [#allocation4], 0  ;;  %s627_s15 = smov [#allocation2]   ;;  %s555_s19 = scalar_lea.hbm %s727_s0, 256 }
   0x3   :  { %s17_s16 = sshll.u32 %s627_s15, 4  ;;  %p556_p0 = scmp.ne.s32.totalorder %s727_s0, %s555_s19  ;;  %s18_s16 = int_to_ptr.vmem [resolvable:$true] %s17_s16 }
   0x4   :  { %p559_p1 = scmp.lt.u32.totalorder %s555_s19, %s727_s0 }
   0x6   :  { %p561_p2 = pnand %p559_p1, %p556_p0 }
   0x8   :  { %564 = shalt.err (!%p561_p2)
}
   0x9   :  { %s565_s24 = scalar_lea.vmem %s18_s16, 256  ;;  %p570_p4 = scmp.lt.s32.totalorder %s18_s16, %s18_s16 }
   0xa   :  { %p566_p3 = scmp.ne.s32.totalorder %s18_s16, %s565_s24  ;;  %p571_p5 = scmp.lt.s32.totalorder %s565_s24, %s565_s24 }
   0xc   :  { %p572_p6 = por %p571_p5, %p570_p4 }
   0xe   :  { %p573_p7 = pnand %p572_p6, %p566_p3 }
  0x10   :  { %576 = shalt.err (!%p573_p7)
}
  0x11   :  { %s628_s25 = smov 128   ;;  %s629_s26 = smov 8  }
  0x12   :  { %23 = dma.hbm_to_vmem [thread:$0]  %s727_s0, 256, %s18_s16, [#allocation3], %s628_s25, %s628_s25, %s629_s26  }
  0x13   :  { %s630_s29 = smov [#allocation5]   ;;  %s577_s7 = scalar_lea.hbm %s728_s1, 768 }
  0x14   :  { %s29_s30 = sshll.u32 %s630_s29, 4  ;;  %p578_p8 = scmp.ne.s32.totalorder %s728_s1, %s577_s7  ;;  %s30_s30 = int_to_ptr.vmem [resolvable:$true] %s29_s30 }
  0x15   :  { %p581_p9 = scmp.lt.u32.totalorder %s577_s7, %s728_s1 }
  0x17   :  { %p583_p10 = pnand %p581_p9, %p578_p8 }
  0x19   :  { %586 = shalt.err (!%p583_p10)
}
  0x1a   :  { %s587_s12 = scalar_lea.vmem %s30_s30, 768  ;;  %p592_p12 = scmp.lt.s32.totalorder %s30_s30, %s30_s30 }
  0x1b   :  { %p588_p11 = scmp.ne.s32.totalorder %s30_s30, %s587_s12  ;;  %p593_p13 = scmp.lt.s32.totalorder %s587_s12, %s587_s12 }
  0x1d   :  { %p594_p0 = por %p593_p13, %p592_p12 }
  0x1f   :  { %p595_p1 = pnand %p594_p0, %p588_p11 }
  0x21   :  { %598 = shalt.err (!%p595_p1)
}
  0x22   :  { %s631_s0 = smov 384   ;;  %s632_s13 = smov 24  }
  0x23   :  { %35 = dma.hbm_to_vmem [thread:$0]  %s728_s1, 768, %s30_s30, [#allocation6], %s631_s0, %s631_s0, %s632_s13  }
  0x24   :  { %621 = dma.done.wait [#allocation3], 256  }
  0x25   :  { %622 = vsyncadd [#allocation3], 4294967040 }
  0x26   :  { %623 = dma.done.wait [#allocation6], 768  }
  0x27   :  { %624 = vsyncadd [#allocation6], 4294966528  ;;  %v633_v0 = vmov 0.0   ;;  %v50_v1 = vld [vmem:[#allocation5 + $0x8] sm:$0xff]  ;;  %v53_v2 = vld [vmem:[#allocation5 + $0x20] sm:$0xff]  ;;  %vm72_vm0 = vcmask 130048   ;;  %v57_v15 = vlaneseq }
  0x28   :  { %143 = vmatprep.mubr.f32.mxu0 %v633_v0  ;;  %v49_v3 = vld [vmem:[#allocation5] sm:$0xff]  ;;  %v528_v4 = vpack.c.bf16 %v53_v2, %v50_v1  ;;  %v52_v5 = vld [vmem:[#allocation5 + $0x18] sm:$0xff]  ;;  %v47_v6 = vld [vmem:[#allocation2] sm:$0xff]  ;;  %vm634_vm1 = vmmov 0   ;;  %v635_v13 = vmov 0   ;;  %vm367_vm2 = vcmask 1043456  }
  0x29   :  { %v530_v7 = vpack.c.bf16 %v52_v5, %v49_v3  ;;  %501 = vmatprep.mubr.msk.f32.mxu1 %vm72_vm0, %v47_v6  ;;  %v48_v8 = vld [vmem:[#allocation2 + $0x8] sm:$0xff]  ;;  %v51_v9 = vld [vmem:[#allocation5 + $0x10] sm:$0xff]  ;;  %v54_v10 = vld [vmem:[#allocation5 + $0x28] sm:$0xff]  ;;  %546 = vset.pattern.permute.xlu0 %v635_v13  ;;  %v58_v16 = vshrl.u32 %v57_v15, 7  ;;  %v316_v44 = vand.u32 127, %v57_v15  ;;  %vm337_vm4 = vcmask 64512  }
  0x2a   :  { %529 = vmatprep.subr.bf16.mxu0 %v528_v4  ;;  %v532_v11 = vpack.c.bf16 %v54_v10, %v51_v9  ;;  %v481_v12 = vld [vmem:[%s730_s3] ss:$0 sm:$0xff]  ;;  %v482_v14 = vld [vmem:[%s730_s3 + $0x1] ss:$0 sm:$0xff] }
  0x2b   :  { %531 = vmatpush1.bf16.msra.mxu0 %v530_v7  ;;  %328 = vperm.xlu0 %546, %v481_v12   ;;  %v63_v17 = vsub.s32 1, %v58_v16  ;;  %v55_v18 = vld [vmem:[%s729_s2] sm:$0x7]  ;;  %v59_v20 = vsub.s32 0, %v58_v16  ;;  %v67_v34 = vsub.s32 2, %v58_v16  ;;  %s636_s2 = smov [#allocation7]  }
  0x2c   :  { %504 = vmatprep.subr.bf16.mxu0 %v633_v0  ;;  %533 = vmatprep.subr.bf16.mxu1 %v532_v11  ;;  %s464_s3 = sshll.u32 %s636_s2, 4  ;;  %s465_s3 = int_to_ptr.vmem [resolvable:$true] %s464_s3 }
  0x2d   :  { %535 = vmatpush3.bf16.msra.mxu1 %v532_v11  ;;  %v64_v19 = vrot.slane %v55_v18, %v63_v17  ;;  %v60_v24 = vrot.slane %v55_v18, %v59_v20  ;;  %v68_v35 = vrot.slane %v55_v18, %v67_v34  ;;  %s599_s21 = scalar_lea.vmem %s465_s3, 256  ;;  %p604_p3 = scmp.lt.s32.totalorder %s465_s3, %s465_s3 }
  0x2e   :  { %477 = vmatmul.mubr.msk.f32.vlgmr.msra.gmra.mrb[0].mxu0 %vm72_vm0, %v47_v6  ;;  %510 = vmatprep.subr.bf16.mxu1 %v633_v0  ;;  %p600_p2 = scmp.ne.s32.totalorder %s465_s3, %s599_s21  ;;  %p605_p4 = scmp.lt.s32.totalorder %s599_s21, %s599_s21 }
  0x2f   :  { %149 = vmatprep.mubr.f32.mxu0 %v633_v0  ;;  %331 = vperm.xlu0 %546, %v482_v14  }
  0x30   :  { %502 = vmatmul.mubr.msk.f32.vlgmr.msra.gmra.mrb[0].mxu1 %vm72_vm0, %v48_v8  ;;  %p606_p5 = por %p605_p4, %p604_p3 }
  0x31   :  { %512 = vmatprep.mubr.msk.bf16.mxu1 %vm634_vm1, %v633_v0 }
  0x32   :  { %478 = vmatmul.mubr.msk.f32.gmra.mrb[2].mxu0 %vm72_vm0, %v48_v8  ;;  %p607_p6 = pnand %p606_p5, %p600_p2 }
  0x33   :  { %506 = vmatprep.mubr.msk.bf16.mxu0 %vm634_vm1, %v633_v0 }
  0xaa   :  { %v329_v45 = vpop.permute.xlu0 %328 }
  0xab   :  { %vm333_vm3 = vcmp.lt.s32.totalorder %v316_v44, %v329_v45 }
  0xae   :  { %v332_v47 = vpop.permute.xlu0 %331 }
  0xaf   :  { %vm334_vm5 = vcmp.lt.s32.totalorder %v316_v44, %v332_v47 }
 0x101   :  { %v145_v21 = vpop.f32.mrb[0].mxu0 }
 0x102   :  { %v147_v22 = vpop.f32.mrb[1].mxu0  ;;  %v146_v29 = vadd.f32 %v145_v21, %v60_v24 }
 0x103   :  { %v148_v23 = vadd.f32 %v147_v22, %v64_v19  ;;  %v503_v36 = vpop.f32.mrb[0].mxu1 }
 0x104   :  { %v231_v31 = vpack.c.bf16 %v146_v29, %v146_v29  ;;  %v228_v37 = vadd.f32 %v503_v36, %v68_v35  ;;  %v222_v38 = vpop.f32.mrb[1].mxu1 }
 0x105   :  { %v233_v25 = vpack.c.bf16 %v148_v23, %v148_v23  ;;  %v151_v26 = vpop.f32.mrb[2].mxu0  ;;  %v223_v39 = vadd.f32 %v222_v38, %v68_v35 }
 0x106   :  { %v153_v27 = vpop.f32.mrb[3].mxu0  ;;  %v152_v32 = vadd.f32 %v151_v26, %v60_v24  ;;  %v363_v40 = vpack.c.bf16 %v228_v37, %v228_v37 }
 0x107   :  { %v154_v28 = vadd.f32 %v153_v27, %v64_v19  ;;  %505 = vmatpush3.bf16.xpose.msra.mxu0 %v233_v25  ;;  %v362_v41 = vpack.c.bf16 %v223_v39, %v223_v39 }
 0x108   :  { %516 = vmatprep.subr.bf16.mxu0 %v633_v0  ;;  %v232_v33 = vpack.c.bf16 %v152_v32, %v152_v32  ;;  %v415_v42 = vsel %vm367_vm2, %v363_v40, 0 }
 0x109   :  { %v234_v30 = vpack.c.bf16 %v154_v28, %v154_v28  ;;  %v369_v43 = vsel %vm367_vm2, %v362_v41, 0 }
 0x10b   :  { %511 = vmatpush3.bf16.xpose.msra.mxu1 %v234_v30 }
 0x10c   :  { %522 = vmatprep.subr.bf16.mxu1 %v633_v0 }
 0x10e   :  { %507 = vmatmul.mubr.bf16.vlgmr.msra.gmra.mrb[4].mxu0 %v231_v31 }
 0x10f   :  { %518 = vmatprep.mubr.msk.bf16.mxu0 %vm634_vm1, %v633_v0  ;;  %517 = vmatpush3.bf16.msra.mxu0 %v369_v43 }
 0x112   :  { %513 = vmatmul.mubr.bf16.vlgmr.msra.gmra.mrb[4].mxu1 %v232_v33 }
 0x113   :  { %524 = vmatprep.mubr.msk.bf16.mxu1 %vm634_vm1, %v633_v0  ;;  %523 = vmatpush3.bf16.msra.mxu1 %v415_v42 }
 0x1e1   :  { %v269_v46 = vpop.f32.mrb[4].mxu0 }
 0x1e2   :  { %v335_v48 = vsel %vm333_vm3, %v269_v46, -1000000.0  ;;  %v508_v49 = vpop.f32.mrb[5].mxu0 }
 0x1e3   :  { %v272_v50 = vpop.f32.mrb[6].mxu0  ;;  %v338_v51 = vsel %vm337_vm4, %v335_v48, -inf }
 0x1e4   :  { %339 = vmax.xlane.f32.xlu1 %v338_v51  ;;  %v509_v52 = vpop.f32.mrb[7].mxu0 }
 0x1e5   :  { %v309_v53 = vpop.f32.mrb[4].mxu1 }
 0x1e6   :  { %v336_v54 = vsel %vm334_vm5, %v309_v53, -1000000.0  ;;  %v514_v55 = vpop.f32.mrb[5].mxu1 }
 0x1e7   :  { %v312_v56 = vpop.f32.mrb[6].mxu1  ;;  %v341_v57 = vsel %vm337_vm4, %v336_v54, -inf }
 0x1e8   :  { %v515_v58 = vpop.f32.mrb[7].mxu1  ;;  %342 = vmax.xlane.f32.xlu1 %v341_v57 }
 0x271   :  { %v340_v59 = vpop.xlane.xlu1 %339 }
 0x272   :  { %v344_v60 = vsub.f32 %v335_v48, %v340_v59 }
 0x274   :  { %v346_v61 = vmul.f32 1.442695, %v344_v60 }
 0x275   :  { %v343_v62 = vpop.xlane.xlu1 %342 }
 0x276   :  { %547 = vpow2.f32 %v346_v61  ;;  %v345_v63 = vsub.f32 %v336_v54, %v343_v62 }
 0x278   :  { %v348_v0 = vmul.f32 1.442695, %v345_v63 }
 0x27a   :  { %549 = vpow2.f32 %v348_v0 }
 0x280   :  { %v548_v1 = vpop.eup %547 }
 0x281   :  { %v350_v2 = vsel %vm337_vm4, %v548_v1, 0.0 }
 0x282   :  { %351 = vadd.xlane.f32.xlu0 %v350_v2 }
 0x284   :  { %v550_v3 = vpop.eup %549 }
 0x285   :  { %v353_v4 = vsel %vm337_vm4, %v550_v3, 0.0 }
 0x286   :  { %354 = vadd.xlane.f32.xlu1 %v353_v4 }
 0x30f   :  { %v352_v5 = vpop.xlane.xlu0 %351 }
 0x310   :  { %551 = vrcp.f32 %v352_v5 }
 0x313   :  { %v355_v6 = vpop.xlane.xlu1 %354 }
 0x314   :  { %553 = vrcp.f32 %v355_v6 }
 0x31a   :  { %v552_v7 = vpop.eup %551 }
 0x31b   :  { %v358_v8 = vmul.f32 %v552_v7, %v548_v1 }
 0x31d   :  { %v360_v9 = vpack.c.bf16 %v358_v8, %v358_v8 }
 0x31e   :  { %v554_v10 = vpop.eup %553 }
 0x31f   :  { %v359_v11 = vmul.f32 %v554_v10, %v550_v3  ;;  %519 = vmatmul.mubr.msk.bf16.vlgmr.msra.gmra.mrb[8].mxu0 %vm337_vm4, %v360_v9 }
 0x321   :  { %v361_v12 = vpack.c.bf16 %v359_v11, %v359_v11 }
 0x323   :  { %525 = vmatmul.mubr.msk.bf16.vlgmr.msra.gmra.mrb[8].mxu1 %vm337_vm4, %v361_v12 }
 0x3f2   :  { %v405_v13 = vpop.f32.mrb[8].mxu0 }
 0x3f3   :  { %457 = vst [vmem:[#allocation7] sm:$0xff] %v405_v13  ;;  %v520_v14 = vpop.f32.mrb[9].mxu0 }
 0x3f4   :  { %v408_v15 = vpop.f32.mrb[10].mxu0 }
 0x3f5   :  { %v521_v16 = vpop.f32.mrb[11].mxu0 }
 0x3f6   :  { %v451_v17 = vpop.f32.mrb[8].mxu1 }
 0x3f7   :  { %458 = vst [vmem:[#allocation7 + $0x8] sm:$0xff] %v451_v17  ;;  %v526_v18 = vpop.f32.mrb[9].mxu1 }
 0x3f8   :  { %v454_v19 = vpop.f32.mrb[10].mxu1 }
 0x3f9   :  { %610 = shalt.err (!%p607_p6)
}
 0x3fa   :  { %s611_s24 = scalar_lea.hbm %s731_s4, 256 }
 0x3fb   :  { %p612_p7 = scmp.ne.s32.totalorder %s731_s4, %s611_s24  ;;  %p615_p8 = scmp.lt.u32.totalorder %s611_s24, %s731_s4 }
 0x3fd   :  { %p617_p9 = pnand %p615_p8, %p612_p7 }
 0x3ff   :  { %620 = shalt.err (!%p617_p9)
}
 0x400   :  { %470 = dma.vmem_to_hbm [thread:$0]  %s465_s3, 256, %s731_s4, [#allocation4], %s628_s25, %s628_s25, %s629_s26   ;;  %v527_v20 = vpop.f32.mrb[11].mxu1 }
 0x401   :  { %625 = dma.done.wait [#allocation4], 256  }
 0x402   :  { %626 = vsyncadd [#allocation4], 4294967040 }
 0x403   :  { %474 = vsyncpa [#allocation3], 1 }
 0x404   :  { %475 = vsyncpa [#allocation6], 1 }
 0x405   :  { %476 = vsyncpa [#allocation4], 1 }

</bundles_post_ra>
